<compile_context>
chip_gen: v7x
topology: tpu7x:2x2x1
jax: 0.10.0
libtpu: 0.0.40
codegen_flags: <defaults>
</compile_context>

<pallas_src>
import functools

import jax
import jax.numpy as jnp
from jax.experimental import pallas as pl
from jax.experimental.pallas import tpu as pltpu


# ----------------------------------------------------------------------------
# Pallas kernel 1: tiled linear  y = x @ W + b (+ residual)
# Operands are pre-cast to bf16 by the wrapper; accumulation is f32.
# ----------------------------------------------------------------------------
def _linear_kernel(x_ref, w_ref, b_ref, o_ref):
    acc = jnp.dot(x_ref[...], w_ref[...], preferred_element_type=jnp.float32)
    o_ref[...] = (acc + b_ref[...]).astype(o_ref.dtype)


def _linear_residual_kernel(x_ref, w_ref, b_ref, r_ref, o_ref):
    acc = jnp.dot(x_ref[...], w_ref[...], preferred_element_type=jnp.float32)
    o_ref[...] = (acc + b_ref[...] + r_ref[...].astype(jnp.float32)).astype(o_ref.dtype)


def pallas_linear(x, w, b, residual=None, out_dtype=None, tm=512):
    """x: (M, K), w: (K, N), b: (N,) [, residual: (M, N)] -> (M, N)."""
    M, K = x.shape
    K2, N = w.shape
    assert K == K2
    out_dtype = out_dtype or x.dtype
    tm = min(tm, M)
    grid = (pl.cdiv(M, tm),)
    in_specs = [
        pl.BlockSpec((tm, K), lambda i: (i, 0)),
        pl.BlockSpec((K, N), lambda i: (0, 0)),
        pl.BlockSpec((1, N), lambda i: (0, 0)),
    ]
    args = [x, w, b.reshape(1, N)]
    if residual is None:
        kern = _linear_kernel
    else:
        in_specs.append(pl.BlockSpec((tm, N), lambda i: (i, 0)))
        args.append(residual)
        kern = _linear_residual_kernel
    return pl.pallas_call(
        kern,
        out_shape=jax.ShapeDtypeStruct((M, N), out_dtype),
        grid=grid,
        in_specs=in_specs,
        out_specs=pl.BlockSpec((tm, N), lambda i: (i, 0)),
        compiler_params=pltpu.CompilerParams(dimension_semantics=("parallel",)),
    )(*args)


# ----------------------------------------------------------------------------
# Pallas kernel 2: fused deformable sampling + per-camera masked aggregation.
# Grid = (batch, query_tile, camera); camera is the trailing "arbitrary"
# reduction axis, output (tq, C) block is resident across cameras.
# ----------------------------------------------------------------------------
def _defagg_kernel(q_ref, ref_ref, wf_ref, bf_ref, v_ref, scale_ref,
                   o_ref, proj_sc, acc_sc, *, H_, W_, nH, P, dh, n_cam,
                   hw_chunk):
    i_cam = pl.program_id(2)
    tq = q_ref.shape[0]
    hw = v_ref.shape[0]
    nP = nH * P
    n_chunks = (hw + hw_chunk - 1) // hw_chunk

    # Per (batch, query-tile) work: fused (off_x | off_y | logits) projection
    # cached in scratch + accumulator reset.
    @pl.when(i_cam == 0)
    def _init():
        proj_sc[...] = (jnp.dot(q_ref[...], wf_ref[...],
                                preferred_element_type=jnp.float32)
                        + bf_ref[...])
        acc_sc[...] = jnp.zeros_like(acc_sc)

    proj = proj_sc[...]                       # (tq, 3*nH*P) f32
    ref = ref_ref[...]                        # (tq, 2P)     f32
    # grid_sample align_corners=False:  pix = loc * size - 0.5
    refx = ref[:, :P] * W_ - 0.5              # (tq, P)
    refy = ref[:, P:] * H_ - 0.5
    scale = scale_ref[...]                    # (tq, 1)  visibility / count

    for h in range(nH):
        offx = proj[:, h * P:(h + 1) * P]
        offy = proj[:, nP + h * P:nP + (h + 1) * P]
        logit = proj[:, 2 * nP + h * P:2 * nP + (h + 1) * P]

        # softmax over the (num_levels * num_points) axis (L == 1), with the
        # per-camera visibility / count scale folded in.
        m = jnp.max(logit, axis=-1, keepdims=True)
        e = jnp.exp(logit - m)
        wgt = e * pl.reciprocal(jnp.sum(e, axis=-1, keepdims=True), approx=True)
        wgt = wgt * scale

        # sampling pixel coords: (ref + off/[W,H]) * [W,H] - 0.5 = ref_pix + off
        x = refx + offx
        y = refy + offy
        x0f = jnp.floor(x)
        y0f = jnp.floor(y)
        lx = x - x0f
        ly = y - y0f
        x0 = x0f.astype(jnp.int32)
        y0 = y0f.astype(jnp.int32)

        # 4 bilinear corners: flat index (tq, P) + weighted coefficient (tq, P)
        corners = []
        for dy in (0, 1):
            for dx in (0, 1):
                xi = x0 + dx
                yi = y0 + dy
                valid = (xi >= 0) & (xi <= W_ - 1) & (yi >= 0) & (yi <= H_ - 1)
                cw = (lx if dx else 1.0 - lx) * (ly if dy else 1.0 - ly)
                coef_c = jnp.where(valid, cw * wgt, 0.0)
                flat_c = jnp.where(valid, yi * W_ + xi, -1)
                corners.append((flat_c, coef_c))

        for c0 in range(0, hw, hw_chunk):
            cs = min(hw_chunk, hw - c0)

            def _accumulate(c0=c0, cs=cs, h=h, corners=corners):
                # 2-D one-hot accumulation: no (tq, 4P, cs) temporary.
                iota = jax.lax.broadcasted_iota(jnp.int32, (tq, cs), 1) + c0
                A = jnp.zeros((tq, cs), jnp.float32)
                for flat_c, coef_c in corners:
                    for k in range(P):
                        A = A + jnp.where(flat_c[:, k:k + 1] == iota,
                                          coef_c[:, k:k + 1], 0.0)
                vh = v_ref[c0:c0 + cs, h * dh:(h + 1) * dh]      # (cs, dh) bf16
                acc_sc[:, h * dh:(h + 1) * dh] += jnp.dot(
                    A.astype(jnp.bfloat16), vh,
                    preferred_element_type=jnp.float32)

            if n_chunks == 1:
                _accumulate()
            else:
                # skip hw chunks no sample of this head/tile falls into
                hit = functools.reduce(
                    jnp.logical_or,
                    [jnp.any((fl >= c0) & (fl < c0 + cs)) for fl, _ in corners])
                pl.when(hit)(_accumulate)

    @pl.when(i_cam == n_cam - 1)
    def _finalize():
        o_ref[...] = acc_sc[...].astype(o_ref.dtype)


def deformable_cross_attn(q, ref_pack, wf, bf, v, scale, H_, W_, nH, P,
                          tq=128, hw_chunk=512):
    """q:(b,Nq,c) bf16  ref_pack:(n,b,Nq,2P) f32  wf:(c,3*nH*P) bf16
    bf:(1,3*nH*P) f32  v:(n,hw,b,c) bf16  scale:(b,n,Nq,1) f32 -> (b,Nq,c) bf16."""
    b, Nq, c = q.shape
    n, hw = v.shape[0], v.shape[1]
    dh = c // nH
    nproj = wf.shape[1]
    tq = min(tq, Nq)
    hw_chunk = min(hw_chunk, hw)
    n_qt = pl.cdiv(Nq, tq)
    kern = functools.partial(_defagg_kernel, H_=H_, W_=W_, nH=nH, P=P, dh=dh,
                             n_cam=n, hw_chunk=hw_chunk)
    return pl.pallas_call(
        kern,
        out_shape=jax.ShapeDtypeStruct((b, Nq, c), jnp.bfloat16),
        grid=(b, n_qt, n),
        in_specs=[
            pl.BlockSpec((None, tq, c), lambda j, qi, i: (j, qi, 0)),            # q
            pl.BlockSpec((None, None, tq, 2 * P), lambda j, qi, i: (i, j, qi, 0)),  # ref
            pl.BlockSpec((c, nproj), lambda j, qi, i: (0, 0)),                   # W fused
            pl.BlockSpec((1, nproj), lambda j, qi, i: (0, 0)),                   # b fused
            pl.BlockSpec((None, hw, None, c), lambda j, qi, i: (i, 0, j, 0)),    # value
            pl.BlockSpec((None, None, tq, 1), lambda j, qi, i: (j, i, qi, 0)),   # scale
        ],
        out_specs=pl.BlockSpec((None, tq, c), lambda j, qi, i: (j, qi, 0)),
        scratch_shapes=[pltpu.VMEM((tq, nproj), jnp.float32),
                        pltpu.VMEM((tq, c), jnp.float32)],
        compiler_params=pltpu.CompilerParams(
            dimension_semantics=("parallel", "parallel", "arbitrary"),
            vmem_limit_bytes=48 * 1024 * 1024),
    )(q, ref_pack, wf, bf, v, scale)


# ----------------------------------------------------------------------------
# CADefnAttn forward
# ----------------------------------------------------------------------------
def cadefn_attn_forward(query, key, value, query_pos, ref_pts_cam,
                        spatial_shapes, bev_mask, params,
                        num_heads, num_points):
    b, Nq, c = query.shape
    n, hw, _, _ = key.shape          # key is unused by MSDeformAttn3D compute
    n_z = ref_pts_cam.shape[3]
    assert len(spatial_shapes) == 1, "kernel specialized for num_levels == 1"
    H_, W_ = spatial_shapes[0]
    assert H_ * W_ == hw
    nH, P, L = num_heads, num_points, 1
    assert P % n_z == 0 and c % nH == 0

    query_residual = query
    q = query + query_pos if query_pos is not None else query
    q_bf = q.astype(jnp.bfloat16)

    # value projection in native (n, hw, b, c) layout (no HBM transpose),
    # bf16 operands / bf16 output for the MXU and halved DMA in the main kernel.
    v_proj = pallas_linear(value.reshape(n * hw * b, c).astype(jnp.bfloat16),
                           params["value_proj_w"].astype(jnp.bfloat16),
                           params["value_proj_b"],
                           out_dtype=jnp.bfloat16, tm=512).reshape(n, hw, b, c)

    # fuse sampling_offsets + attention_weights into one projection, columns
    # laid out as [off_x (head-major) | off_y | logits]
    soff_w = params["soff_w"].reshape(c, nH, L, P, 2)
    soff_b = params["soff_b"].reshape(nH, L, P, 2)
    offx_w = soff_w[..., 0].reshape(c, nH * L * P)
    offy_w = soff_w[..., 1].reshape(c, nH * L * P)
    offx_b = soff_b[..., 0].reshape(nH * L * P)
    offy_b = soff_b[..., 1].reshape(nH * L * P)
    wf = jnp.concatenate([offx_w, offy_w, params["aw_w"]],
                         axis=1).astype(jnp.bfloat16)            # (c, 3*nH*P)
    bf = jnp.concatenate([offx_b, offy_b, params["aw_b"]], axis=0).reshape(1, -1)

    # reference points tiled per point (point p uses z anchor p % n_z), packed
    # as (n, b, Nq, 2P) = [x tiled | y tiled]
    reps = P // n_z
    rx = jnp.tile(ref_pts_cam[..., 0], (1, 1, 1, reps))          # (n,b,Nq,P)
    ry = jnp.tile(ref_pts_cam[..., 1], (1, 1, 1, reps))
    ref_pack = jnp.concatenate([rx, ry], axis=-1)                # (n,b,Nq,2P)

    # per-camera visibility and per-query visible-camera count folded into one
    # scale = vis / clamp(count, 1): removes the finalize divide in-kernel.
    vis = jnp.any(bev_mask, axis=-1)                             # (n,b,Nq)
    vis_bn = jnp.transpose(vis, (1, 0, 2)).astype(jnp.float32)   # (b,n,Nq)
    count = jnp.maximum(jnp.sum(vis_bn, axis=1, keepdims=True), 1.0)
    scale = (vis_bn / count)[..., None]                          # (b,n,Nq,1)

    query_out = deformable_cross_attn(q_bf, ref_pack, wf, bf, v_proj, scale,
                                      H_, W_, nH, P)             # (b,Nq,c) bf16

    # output projection + residual (fused); dropout is eval-mode identity
    # TODO(synk): training-mode dropout (p=0.1) not applied; eval-mode identity.
    out = pallas_linear(query_out.reshape(b * Nq, c),
                        params["out_w"].astype(jnp.bfloat16), params["out_b"],
                        residual=query_residual.reshape(b * Nq, c),
                        out_dtype=query.dtype, tm=256)
    return out.reshape(b, Nq, c)


# ----------------------------------------------------------------------------
# demo
# ----------------------------------------------------------------------------
if __name__ == "__main__":
    in_c = 64
    num_heads = 4
    num_points = 8
    num_levels = 1
    b, n, Nq = 2, 3, 64
    n_z = 4
    H_, W_ = 8, 8
    hw = H_ * W_
    f32 = jnp.float32

    root = jax.random.PRNGKey(0)
    ks = jax.random.split(root, 12)

    query = jax.random.normal(ks[0], (b, Nq, in_c), f32)
    query_pos = 0.1 * jax.random.normal(ks[1], (b, Nq, in_c), f32)
    key = jax.random.normal(ks[2], (n, hw, b, in_c), f32)
    value = jax.random.normal(ks[3], (n, hw, b, in_c), f32)
    ref_pts_cam = jax.random.uniform(ks[4], (n, b, Nq, n_z, 2), f32)
    bev_mask = jax.random.uniform(ks[5], (n, b, Nq, n_z)) > 0.5
    spatial_shapes = ((H_, W_),)

    def init_linear(k, fan_in, fan_out, scale=0.05):
        kw, kb = jax.random.split(k)
        return (scale * jax.random.normal(kw, (fan_in, fan_out), f32),
                scale * jax.random.normal(kb, (fan_out,), f32))

    params = {}
    params["value_proj_w"], params["value_proj_b"] = init_linear(ks[6], in_c, in_c)
    params["soff_w"], params["soff_b"] = init_linear(
        ks[7], in_c, num_heads * num_levels * num_points * 2)
    params["aw_w"], params["aw_b"] = init_linear(
        ks[8], in_c, num_heads * num_levels * num_points)
    params["out_w"], params["out_b"] = init_linear(ks[9], in_c, in_c)

    out = cadefn_attn_forward(query, key, value, query_pos, ref_pts_cam,
                              spatial_shapes, bev_mask, params,
                              num_heads=num_heads, num_points=num_points)
    out = jax.block_until_ready(out)
    assert out.shape == (b, Nq, in_c)
    assert bool(jnp.all(jnp.isfinite(out)))
    print("KERNEL_OK")
</pallas_src>

<mosaic_0001>
module attributes {stable_mosaic.version = 11 : i64} {
  func.func @_linear_kernel(%arg0: i32, %arg1: memref<384x64xbf16, #tpu.memory_space<vmem>>, %arg2: memref<64x64xbf16, #tpu.memory_space<vmem>>, %arg3: memref<1x64xf32, #tpu.memory_space<vmem>>, %arg4: memref<384x64xbf16, #tpu.memory_space<vmem>>) attributes {dimension_semantics = [#tpu.dimension_semantics<parallel>], iteration_bounds = array<i64: 1>, scalar_prefetch = 0 : i64, scratch_operands = 0 : i64, tpu.core_type = #tpu.core_type<tc>, window_params = [{transform_indices = @transform_0, window_bounds = array<i64: 384, 64>}, {pipeline_mode = #tpu.pipeline_mode<synchronous>, transform_indices = @transform_1, window_bounds = array<i64: 64, 64>}, {pipeline_mode = #tpu.pipeline_mode<synchronous>, transform_indices = @transform_2, window_bounds = array<i64: 1, 64>}, {transform_indices = @transform_3, window_bounds = array<i64: 384, 64>}]} {
    %c0 = arith.constant 0 : index
    %c0_0 = arith.constant 0 : index
    %0 = vector.load %arg1[%c0, %c0_0] : memref<384x64xbf16, #tpu.memory_space<vmem>>, vector<384x64xbf16>
    %c0_1 = arith.constant 0 : index
    %c0_2 = arith.constant 0 : index
    %1 = vector.load %arg2[%c0_1, %c0_2] : memref<64x64xbf16, #tpu.memory_space<vmem>>, vector<64x64xbf16>
    %cst = arith.constant dense<0.000000e+00> : vector<384x64xf32>
    %2 = tpu.matmul %0, %1, %cst {dimension_numbers = #tpu.dot_dimension_numbers<[1], [0], [0], [1], [0, 0, 1, 1], [], []>} : vector<384x64xbf16>, vector<64x64xbf16>, vector<384x64xf32> -> vector<384x64xf32>
    %c0_3 = arith.constant 0 : index
    %c0_4 = arith.constant 0 : index
    %3 = vector.load %arg3[%c0_3, %c0_4] : memref<1x64xf32, #tpu.memory_space<vmem>>, vector<1x64xf32>
    %4 = vector.broadcast %3 : vector<1x64xf32> to vector<384x64xf32>
    %5 = arith.addf %2, %4 : vector<384x64xf32>
    %6 = arith.truncf %5 : vector<384x64xf32> to vector<384x64xbf16>
    %c0_5 = arith.constant 0 : index
    %c0_6 = arith.constant 0 : index
    %7 = vector.load %arg4[%c0_5, %c0_6] : memref<384x64xbf16, #tpu.memory_space<vmem>>, vector<384x64xbf16>
    tpu.vector_store %arg4[%c0_5, %c0_6], %6 {strides = array<i32>} : memref<384x64xbf16, #tpu.memory_space<vmem>>, vector<384x64xbf16>,
    return
  }
  func.func @transform_0(%arg0: i32) -> (i32, i32) {
    %c0_i32 = arith.constant 0 : i32
    %c0_i32_0 = arith.constant 0 : i32
    return %arg0, %c0_i32 : i32, i32
  }
  func.func @transform_1(%arg0: i32) -> (i32, i32) {
    %c0_i32 = arith.constant 0 : i32
    %c0_i32_0 = arith.constant 0 : i32
    %c0_i32_1 = arith.constant 0 : i32
    return %c0_i32, %c0_i32_0 : i32, i32
  }
  func.func @transform_2(%arg0: i32) -> (i32, i32) {
    %c0_i32 = arith.constant 0 : i32
    %c0_i32_0 = arith.constant 0 : i32
    %c0_i32_1 = arith.constant 0 : i32
    return %c0_i32, %c0_i32_0 : i32, i32
  }
  func.func @transform_3(%arg0: i32) -> (i32, i32) {
    %c0_i32 = arith.constant 0 : i32
    %c0_i32_0 = arith.constant 0 : i32
    return %arg0, %c0_i32 : i32, i32
  }
}

</mosaic_0001>

<bundles_post_ra>
// kernel: tpu_custom_call.1
= control target key start
LH: loop header
LB: loop body
LE: loop exit
PB: predicated region body
PF: predicated region fallthrough
CT: control target
= control target key end

     0   :  { %vm222_vm0 = vcmask 523264   ;;  %vm712_vm1 = vcmask 519168   ;;  %s1407_s1 = inlined_call_operand.vmem [shape: bf16[64,64], index: 1, kind: input, shape index: {}]   ;;  %s1408_s0 = inlined_call_operand.vmem [shape: bf16[384,64], index: 0, kind: input, shape index: {}]   ;;  %s1409_s2 = inlined_call_operand.vmem [shape: f32[1,64], index: 2, kind: input, shape index: {}]   ;;  %s1410_s3 = inlined_call_operand.vmem [shape: bf16[384,64], index: 3, kind: output, shape index: {}]  }
   0x1   :  { %v1006_v0 = vld [vmem:[%s1407_s1] sm:$0xff]   ;;  %v1007_v1 = vld [vmem:[%s1407_s1 + $0x8] sm:$0xff]   ;;  %v1008_v2 = vld [vmem:[%s1407_s1 + $0x10] sm:$0xff]  }
   0x2   :  { %942 = vmatprep.subr.bf16.mxu0 %v1006_v0  ;;  %998 = vmatprep.subr.bf16.mxu1 %v1006_v0  ;;  %v1010_v3 = vld [vmem:[%s1408_s0] sm:$0xff]   ;;  %v1009_v5 = vld [vmem:[%s1407_s1 + $0x18] sm:$0xff]   ;;  %v1012_v6 = vld [vmem:[%s1408_s0 + $0x8] sm:$0xff]  }
   0x3   :  { %943 = vmatpush3.bf16.msra.mxu0 %v1006_v0  ;;  %1002 = vmatpush3.bf16.msra.mxu1 %v1006_v0  ;;  %v1011_v4 = vld [vmem:[%s1408_s0 + $0x60] sm:$0xff]   ;;  %v1013_v7 = vld [vmem:[%s1408_s0 + $0x68] sm:$0xff]   ;;  %v1014_v8 = vld [vmem:[%s1408_s0 + $0x10] sm:$0xff]  }
   0x4   :  { %944 = vmatprep.subr.bf16.mxu0 %v1007_v1  ;;  %999 = vmatprep.subr.bf16.mxu1 %v1007_v1  ;;  %v1015_v9 = vld [vmem:[%s1408_s0 + $0x70] sm:$0xff]   ;;  %v1016_v10 = vld [vmem:[%s1408_s0 + $0x18] sm:$0xff]   ;;  %v1018_v12 = vld [vmem:[%s1408_s0 + $0x20] sm:$0xff]  }
   0x5   :  { %950 = vmatprep.mubr.msk.bf16.mxu0 %vm222_vm0, %v1010_v3  ;;  %974 = vmatprep.mubr.msk.bf16.mxu1 %vm222_vm0, %v1011_v4  ;;  %v1017_v11 = vld [vmem:[%s1408_s0 + $0x78] sm:$0xff]   ;;  %v1019_v13 = vld [vmem:[%s1408_s0 + $0x80] sm:$0xff]   ;;  %v1020_v14 = vld [vmem:[%s1408_s0 + $0x28] sm:$0xff]  }
   0x6   :  { %v1021_v15 = vld [vmem:[%s1408_s0 + $0x88] sm:$0xff]   ;;  %v1022_v16 = vld [vmem:[%s1408_s0 + $0x30] sm:$0xff]   ;;  %v1024_v18 = vld [vmem:[%s1408_s0 + $0x38] sm:$0xff]  }
   0x7   :  { %945 = vmatpush3.bf16.msra.mxu0 %v1007_v1  ;;  %1003 = vmatpush3.bf16.msra.mxu1 %v1007_v1  ;;  %v1023_v17 = vld [vmem:[%s1408_s0 + $0x90] sm:$0xff]   ;;  %v1025_v19 = vld [vmem:[%s1408_s0 + $0x98] sm:$0xff]   ;;  %v1026_v20 = vld [vmem:[%s1408_s0 + $0x40] sm:$0xff]  }
   0x8   :  { %946 = vmatprep.subr.bf16.mxu0 %v1008_v2  ;;  %1000 = vmatprep.subr.bf16.mxu1 %v1008_v2  ;;  %v1027_v21 = vld [vmem:[%s1408_s0 + $0xa0] sm:$0xff]   ;;  %v1028_v22 = vld [vmem:[%s1408_s0 + $0x48] sm:$0xff]   ;;  %v1030_v24 = vld [vmem:[%s1408_s0 + $0x50] sm:$0xff]  }
   0x9   :  { %v1029_v23 = vld [vmem:[%s1408_s0 + $0xa8] sm:$0xff]   ;;  %v1031_v25 = vld [vmem:[%s1408_s0 + $0xb0] sm:$0xff]   ;;  %v1032_v26 = vld [vmem:[%s1408_s0 + $0x58] sm:$0xff]  }
   0xa   :  { %v1033_v27 = vld [vmem:[%s1408_s0 + $0xb8] sm:$0xff]   ;;  %v1165_v28 = vld [vmem:[%s1409_s2] ss:$0 sm:$0xff] }
   0xb   :  { %947 = vmatpush3.bf16.msra.mxu0 %v1008_v2  ;;  %1004 = vmatpush3.bf16.msra.mxu1 %v1008_v2 }
   0xc   :  { %948 = vmatprep.subr.bf16.mxu0 %v1009_v5  ;;  %1001 = vmatprep.subr.bf16.mxu1 %v1009_v5 }
   0xf   :  { %949 = vmatpush3.bf16.msra.mxu0 %v1009_v5  ;;  %1005 = vmatpush3.bf16.msra.mxu1 %v1009_v5 }
  0x12   :  { %951 = vmatmul.mubr.msk.bf16.vlgmr.msra.gmra.mrb[0].mxu0 %vm222_vm0, %v1012_v6  ;;  %975 = vmatmul.mubr.msk.bf16.vlgmr.msra.gmra.mrb[0].mxu1 %vm222_vm0, %v1013_v7 }
  0x13   :  { %954 = vmatprep.mubr.msk.bf16.mxu0 %vm222_vm0, %v1014_v8  ;;  %978 = vmatprep.mubr.msk.bf16.mxu1 %vm222_vm0, %v1015_v9 }
  0x1a   :  { %955 = vmatmul.mubr.msk.bf16.gmra.mrb[4].mxu0 %vm222_vm0, %v1016_v10  ;;  %979 = vmatmul.mubr.msk.bf16.gmra.mrb[4].mxu1 %vm222_vm0, %v1017_v11 }
  0x1b   :  { %958 = vmatprep.mubr.msk.bf16.mxu0 %vm222_vm0, %v1018_v12  ;;  %982 = vmatprep.mubr.msk.bf16.mxu1 %vm222_vm0, %v1019_v13 }
  0x22   :  { %959 = vmatmul.mubr.msk.bf16.gmra.mrb[8].mxu0 %vm222_vm0, %v1020_v14  ;;  %983 = vmatmul.mubr.msk.bf16.gmra.mrb[8].mxu1 %vm222_vm0, %v1021_v15 }
  0x23   :  { %962 = vmatprep.mubr.msk.bf16.mxu0 %vm222_vm0, %v1022_v16  ;;  %986 = vmatprep.mubr.msk.bf16.mxu1 %vm222_vm0, %v1023_v17 }
  0x2a   :  { %963 = vmatmul.mubr.msk.bf16.gmra.mrb[12].mxu0 %vm222_vm0, %v1024_v18  ;;  %987 = vmatmul.mubr.msk.bf16.gmra.mrb[12].mxu1 %vm222_vm0, %v1025_v19 }
  0x2b   :  { %966 = vmatprep.mubr.msk.bf16.mxu0 %vm222_vm0, %v1026_v20  ;;  %990 = vmatprep.mubr.msk.bf16.mxu1 %vm222_vm0, %v1027_v21 }
  0x32   :  { %967 = vmatmul.mubr.msk.bf16.gmra.mrb[16].mxu0 %vm222_vm0, %v1028_v22  ;;  %991 = vmatmul.mubr.msk.bf16.gmra.mrb[16].mxu1 %vm222_vm0, %v1029_v23 }
  0x33   :  { %970 = vmatprep.mubr.msk.bf16.mxu0 %vm222_vm0, %v1030_v24  ;;  %994 = vmatprep.mubr.msk.bf16.mxu1 %vm222_vm0, %v1031_v25 }
  0x3a   :  { %971 = vmatmul.mubr.msk.bf16.gmra.mrb[20].mxu0 %vm222_vm0, %v1032_v26  ;;  %995 = vmatmul.mubr.msk.bf16.gmra.mrb[20].mxu1 %vm222_vm0, %v1033_v27 }
  0xe5   :  { %v952_v29 = vpop.f32.mrb[0].mxu0  ;;  %v976_v30 = vpop.f32.mrb[0].mxu1 }
  0xe6   :  { %v338_v31 = vadd.f32 %v952_v29, %v1165_v28  ;;  %v434_v32 = vadd.f32 %v976_v30, %v1165_v28  ;;  %v329_v33 = vpop.f32.mrb[1].mxu0  ;;  %v425_v34 = vpop.f32.mrb[1].mxu1 }
  0xe7   :  { %v330_v35 = vadd.f32 %v1165_v28, %v329_v33  ;;  %v426_v36 = vadd.f32 %v1165_v28, %v425_v34  ;;  %v953_v37 = vpop.f32.mrb[2].mxu0  ;;  %v977_v38 = vpop.f32.mrb[2].mxu1 }
  0xe8   :  { %v868_v39 = vpack.c.bf16 %v338_v31, %v338_v31  ;;  %v892_v40 = vpack.c.bf16 %v434_v32, %v434_v32  ;;  %v341_v41 = vadd.f32 %v953_v37, %v1165_v28  ;;  %v437_v42 = vadd.f32 %v977_v38, %v1165_v28  ;;  %v332_v43 = vpop.f32.mrb[3].mxu0  ;;  %v428_v44 = vpop.f32.mrb[3].mxu1 }
  0xe9   :  { %v866_v45 = vpack.c.bf16 %v330_v35, %v330_v35  ;;  %v890_v46 = vpack.c.bf16 %v426_v36, %v426_v36  ;;  %v333_v47 = vadd.f32 %v1165_v28, %v332_v43  ;;  %v429_v48 = vadd.f32 %v1165_v28, %v428_v44 }
  0xea   :  { %715 = vst.msk [vmem:[%s1410_s3 + $0x8] sm:$0xf] %vm712_vm1, %v868_v39  ;;  %739 = vst.msk [vmem:[%s1410_s3 + $0x68] sm:$0xf] %vm712_vm1, %v892_v40  ;;  %v869_v49 = vpack.c.bf16 %v341_v41, %v341_v41  ;;  %v893_v50 = vpack.c.bf16 %v437_v42, %v437_v42 }
  0xeb   :  { %713 = vst.msk [vmem:[%s1410_s3] sm:$0xf] %vm712_vm1, %v866_v45  ;;  %737 = vst.msk [vmem:[%s1410_s3 + $0x60] sm:$0xf] %vm712_vm1, %v890_v46  ;;  %v867_v51 = vpack.c.bf16 %v333_v47, %v333_v47  ;;  %v891_v52 = vpack.c.bf16 %v429_v48, %v429_v48 }
  0xec   :  { %716 = vst.msk [vmem:[%s1410_s3 + $0xc] sm:$0xf] %vm712_vm1, %v869_v49  ;;  %740 = vst.msk [vmem:[%s1410_s3 + $0x6c] sm:$0xf] %vm712_vm1, %v893_v50 }
  0xed   :  { %714 = vst.msk [vmem:[%s1410_s3 + $0x4] sm:$0xf] %vm712_vm1, %v867_v51  ;;  %738 = vst.msk [vmem:[%s1410_s3 + $0x64] sm:$0xf] %vm712_vm1, %v891_v52  ;;  %v956_v53 = vpop.f32.mrb[4].mxu0  ;;  %v980_v54 = vpop.f32.mrb[4].mxu1 }
  0xee   :  { %v354_v55 = vadd.f32 %v956_v53, %v1165_v28  ;;  %v450_v56 = vadd.f32 %v980_v54, %v1165_v28  ;;  %v345_v57 = vpop.f32.mrb[5].mxu0  ;;  %v441_v58 = vpop.f32.mrb[5].mxu1 }
  0xef   :  { %v346_v59 = vadd.f32 %v1165_v28, %v345_v57  ;;  %v442_v60 = vadd.f32 %v1165_v28, %v441_v58  ;;  %v957_v61 = vpop.f32.mrb[6].mxu0  ;;  %v981_v62 = vpop.f32.mrb[6].mxu1 }
  0xf0   :  { %v872_v63 = vpack.c.bf16 %v354_v55, %v354_v55  ;;  %v896_v0 = vpack.c.bf16 %v450_v56, %v450_v56  ;;  %v357_v1 = vadd.f32 %v957_v61, %v1165_v28  ;;  %v453_v2 = vadd.f32 %v981_v62, %v1165_v28  ;;  %v348_v3 = vpop.f32.mrb[7].mxu0  ;;  %v444_v4 = vpop.f32.mrb[7].mxu1 }
  0xf1   :  { %v870_v5 = vpack.c.bf16 %v346_v59, %v346_v59  ;;  %v894_v6 = vpack.c.bf16 %v442_v60, %v442_v60  ;;  %v349_v7 = vadd.f32 %v1165_v28, %v348_v3  ;;  %v445_v8 = vadd.f32 %v1165_v28, %v444_v4 }
  0xf2   :  { %719 = vst.msk [vmem:[%s1410_s3 + $0x18] sm:$0xf] %vm712_vm1, %v872_v63  ;;  %743 = vst.msk [vmem:[%s1410_s3 + $0x78] sm:$0xf] %vm712_vm1, %v896_v0  ;;  %v873_v9 = vpack.c.bf16 %v357_v1, %v357_v1  ;;  %v897_v10 = vpack.c.bf16 %v453_v2, %v453_v2 }
  0xf3   :  { %717 = vst.msk [vmem:[%s1410_s3 + $0x10] sm:$0xf] %vm712_vm1, %v870_v5  ;;  %741 = vst.msk [vmem:[%s1410_s3 + $0x70] sm:$0xf] %vm712_vm1, %v894_v6  ;;  %v871_v11 = vpack.c.bf16 %v349_v7, %v349_v7  ;;  %v895_v12 = vpack.c.bf16 %v445_v8, %v445_v8 }
  0xf4   :  { %720 = vst.msk [vmem:[%s1410_s3 + $0x1c] sm:$0xf] %vm712_vm1, %v873_v9  ;;  %744 = vst.msk [vmem:[%s1410_s3 + $0x7c] sm:$0xf] %vm712_vm1, %v897_v10 }
  0xf5   :  { %718 = vst.msk [vmem:[%s1410_s3 + $0x14] sm:$0xf] %vm712_vm1, %v871_v11  ;;  %742 = vst.msk [vmem:[%s1410_s3 + $0x74] sm:$0xf] %vm712_vm1, %v895_v12  ;;  %v960_v13 = vpop.f32.mrb[8].mxu0  ;;  %v984_v14 = vpop.f32.mrb[8].mxu1 }
  0xf6   :  { %v370_v15 = vadd.f32 %v960_v13, %v1165_v28  ;;  %v466_v16 = vadd.f32 %v984_v14, %v1165_v28  ;;  %v361_v17 = vpop.f32.mrb[9].mxu0  ;;  %v457_v18 = vpop.f32.mrb[9].mxu1 }
  0xf7   :  { %v362_v19 = vadd.f32 %v1165_v28, %v361_v17  ;;  %v458_v20 = vadd.f32 %v1165_v28, %v457_v18  ;;  %v961_v21 = vpop.f32.mrb[10].mxu0  ;;  %v985_v22 = vpop.f32.mrb[10].mxu1 }
  0xf8   :  { %v876_v23 = vpack.c.bf16 %v370_v15, %v370_v15  ;;  %v900_v24 = vpack.c.bf16 %v466_v16, %v466_v16  ;;  %v373_v25 = vadd.f32 %v961_v21, %v1165_v28  ;;  %v469_v26 = vadd.f32 %v985_v22, %v1165_v28  ;;  %v364_v27 = vpop.f32.mrb[11].mxu0  ;;  %v460_v29 = vpop.f32.mrb[11].mxu1 }
  0xf9   :  { %v874_v30 = vpack.c.bf16 %v362_v19, %v362_v19  ;;  %v898_v31 = vpack.c.bf16 %v458_v20, %v458_v20  ;;  %v365_v32 = vadd.f32 %v1165_v28, %v364_v27  ;;  %v461_v33 = vadd.f32 %v1165_v28, %v460_v29 }
  0xfa   :  { %723 = vst.msk [vmem:[%s1410_s3 + $0x28] sm:$0xf] %vm712_vm1, %v876_v23  ;;  %747 = vst.msk [vmem:[%s1410_s3 + $0x88] sm:$0xf] %vm712_vm1, %v900_v24  ;;  %v877_v34 = vpack.c.bf16 %v373_v25, %v373_v25  ;;  %v901_v35 = vpack.c.bf16 %v469_v26, %v469_v26 }
  0xfb   :  { %721 = vst.msk [vmem:[%s1410_s3 + $0x20] sm:$0xf] %vm712_vm1, %v874_v30  ;;  %745 = vst.msk [vmem:[%s1410_s3 + $0x80] sm:$0xf] %vm712_vm1, %v898_v31  ;;  %v875_v36 = vpack.c.bf16 %v365_v32, %v365_v32  ;;  %v899_v37 = vpack.c.bf16 %v461_v33, %v461_v33 }
  0xfc   :  { %724 = vst.msk [vmem:[%s1410_s3 + $0x2c] sm:$0xf] %vm712_vm1, %v877_v34  ;;  %748 = vst.msk [vmem:[%s1410_s3 + $0x8c] sm:$0xf] %vm712_vm1, %v901_v35 }
  0xfd   :  { %722 = vst.msk [vmem:[%s1410_s3 + $0x24] sm:$0xf] %vm712_vm1, %v875_v36  ;;  %746 = vst.msk [vmem:[%s1410_s3 + $0x84] sm:$0xf] %vm712_vm1, %v899_v37  ;;  %v964_v38 = vpop.f32.mrb[12].mxu0  ;;  %v988_v39 = vpop.f32.mrb[12].mxu1 }
  0xfe   :  { %v386_v40 = vadd.f32 %v964_v38, %v1165_v28  ;;  %v482_v41 = vadd.f32 %v988_v39, %v1165_v28  ;;  %v377_v42 = vpop.f32.mrb[13].mxu0  ;;  %v473_v43 = vpop.f32.mrb[13].mxu1 }
  0xff   :  { %v378_v44 = vadd.f32 %v1165_v28, %v377_v42  ;;  %v474_v45 = vadd.f32 %v1165_v28, %v473_v43  ;;  %v965_v46 = vpop.f32.mrb[14].mxu0  ;;  %v989_v47 = vpop.f32.mrb[14].mxu1 }
 0x100   :  { %v880_v48 = vpack.c.bf16 %v386_v40, %v386_v40  ;;  %v904_v49 = vpack.c.bf16 %v482_v41, %v482_v41  ;;  %v389_v50 = vadd.f32 %v965_v46, %v1165_v28  ;;  %v485_v51 = vadd.f32 %v989_v47, %v1165_v28  ;;  %v380_v52 = vpop.f32.mrb[15].mxu0  ;;  %v476_v53 = vpop.f32.mrb[15].mxu1 }
 0x101   :  { %v878_v54 = vpack.c.bf16 %v378_v44, %v378_v44  ;;  %v902_v55 = vpack.c.bf16 %v474_v45, %v474_v45  ;;  %v381_v56 = vadd.f32 %v1165_v28, %v380_v52  ;;  %v477_v57 = vadd.f32 %v1165_v28, %v476_v53 }
 0x102   :  { %727 = vst.msk [vmem:[%s1410_s3 + $0x38] sm:$0xf] %vm712_vm1, %v880_v48  ;;  %751 = vst.msk [vmem:[%s1410_s3 + $0x98] sm:$0xf] %vm712_vm1, %v904_v49  ;;  %v881_v58 = vpack.c.bf16 %v389_v50, %v389_v50  ;;  %v905_v59 = vpack.c.bf16 %v485_v51, %v485_v51 }
 0x103   :  { %725 = vst.msk [vmem:[%s1410_s3 + $0x30] sm:$0xf] %vm712_vm1, %v878_v54  ;;  %749 = vst.msk [vmem:[%s1410_s3 + $0x90] sm:$0xf] %vm712_vm1, %v902_v55  ;;  %v879_v60 = vpack.c.bf16 %v381_v56, %v381_v56  ;;  %v903_v61 = vpack.c.bf16 %v477_v57, %v477_v57 }
 0x104   :  { %728 = vst.msk [vmem:[%s1410_s3 + $0x3c] sm:$0xf] %vm712_vm1, %v881_v58  ;;  %752 = vst.msk [vmem:[%s1410_s3 + $0x9c] sm:$0xf] %vm712_vm1, %v905_v59 }
 0x105   :  { %726 = vst.msk [vmem:[%s1410_s3 + $0x34] sm:$0xf] %vm712_vm1, %v879_v60  ;;  %750 = vst.msk [vmem:[%s1410_s3 + $0x94] sm:$0xf] %vm712_vm1, %v903_v61  ;;  %v968_v62 = vpop.f32.mrb[16].mxu0  ;;  %v992_v63 = vpop.f32.mrb[16].mxu1 }
 0x106   :  { %v402_v0 = vadd.f32 %v968_v62, %v1165_v28  ;;  %v498_v1 = vadd.f32 %v992_v63, %v1165_v28  ;;  %v393_v2 = vpop.f32.mrb[17].mxu0  ;;  %v489_v3 = vpop.f32.mrb[17].mxu1 }
 0x107   :  { %v394_v4 = vadd.f32 %v1165_v28, %v393_v2  ;;  %v490_v5 = vadd.f32 %v1165_v28, %v489_v3  ;;  %v969_v6 = vpop.f32.mrb[18].mxu0  ;;  %v993_v7 = vpop.f32.mrb[18].mxu1 }
 0x108   :  { %v884_v8 = vpack.c.bf16 %v402_v0, %v402_v0  ;;  %v908_v9 = vpack.c.bf16 %v498_v1, %v498_v1  ;;  %v405_v10 = vadd.f32 %v969_v6, %v1165_v28  ;;  %v501_v11 = vadd.f32 %v993_v7, %v1165_v28  ;;  %v396_v12 = vpop.f32.mrb[19].mxu0  ;;  %v492_v13 = vpop.f32.mrb[19].mxu1 }
 0x109   :  { %v882_v14 = vpack.c.bf16 %v394_v4, %v394_v4  ;;  %v906_v15 = vpack.c.bf16 %v490_v5, %v490_v5  ;;  %v397_v16 = vadd.f32 %v1165_v28, %v396_v12  ;;  %v493_v17 = vadd.f32 %v1165_v28, %v492_v13 }
 0x10a   :  { %731 = vst.msk [vmem:[%s1410_s3 + $0x48] sm:$0xf] %vm712_vm1, %v884_v8  ;;  %755 = vst.msk [vmem:[%s1410_s3 + $0xa8] sm:$0xf] %vm712_vm1, %v908_v9  ;;  %v885_v18 = vpack.c.bf16 %v405_v10, %v405_v10  ;;  %v909_v19 = vpack.c.bf16 %v501_v11, %v501_v11 }
 0x10b   :  { %729 = vst.msk [vmem:[%s1410_s3 + $0x40] sm:$0xf] %vm712_vm1, %v882_v14  ;;  %753 = vst.msk [vmem:[%s1410_s3 + $0xa0] sm:$0xf] %vm712_vm1, %v906_v15  ;;  %v883_v20 = vpack.c.bf16 %v397_v16, %v397_v16  ;;  %v907_v21 = vpack.c.bf16 %v493_v17, %v493_v17 }
 0x10c   :  { %732 = vst.msk [vmem:[%s1410_s3 + $0x4c] sm:$0xf] %vm712_vm1, %v885_v18  ;;  %756 = vst.msk [vmem:[%s1410_s3 + $0xac] sm:$0xf] %vm712_vm1, %v909_v19 }
 0x10d   :  { %730 = vst.msk [vmem:[%s1410_s3 + $0x44] sm:$0xf] %vm712_vm1, %v883_v20  ;;  %754 = vst.msk [vmem:[%s1410_s3 + $0xa4] sm:$0xf] %vm712_vm1, %v907_v21  ;;  %v972_v22 = vpop.f32.mrb[20].mxu0  ;;  %v996_v23 = vpop.f32.mrb[20].mxu1 }
 0x10e   :  { %v418_v24 = vadd.f32 %v972_v22, %v1165_v28  ;;  %v514_v25 = vadd.f32 %v996_v23, %v1165_v28  ;;  %v409_v26 = vpop.f32.mrb[21].mxu0  ;;  %v505_v27 = vpop.f32.mrb[21].mxu1 }
 0x10f   :  { %v410_v29 = vadd.f32 %v1165_v28, %v409_v26  ;;  %v506_v30 = vadd.f32 %v1165_v28, %v505_v27  ;;  %v973_v31 = vpop.f32.mrb[22].mxu0  ;;  %v997_v32 = vpop.f32.mrb[22].mxu1 }
 0x110   :  { %v888_v33 = vpack.c.bf16 %v418_v24, %v418_v24  ;;  %v912_v34 = vpack.c.bf16 %v514_v25, %v514_v25  ;;  %v421_v35 = vadd.f32 %v973_v31, %v1165_v28  ;;  %v517_v36 = vadd.f32 %v997_v32, %v1165_v28  ;;  %v412_v37 = vpop.f32.mrb[23].mxu0  ;;  %v508_v38 = vpop.f32.mrb[23].mxu1 }
 0x111   :  { %v886_v39 = vpack.c.bf16 %v410_v29, %v410_v29  ;;  %v910_v40 = vpack.c.bf16 %v506_v30, %v506_v30  ;;  %v413_v41 = vadd.f32 %v1165_v28, %v412_v37  ;;  %v509_v42 = vadd.f32 %v1165_v28, %v508_v38 }
 0x112   :  { %735 = vst.msk [vmem:[%s1410_s3 + $0x58] sm:$0xf] %vm712_vm1, %v888_v33  ;;  %759 = vst.msk [vmem:[%s1410_s3 + $0xb8] sm:$0xf] %vm712_vm1, %v912_v34  ;;  %v889_v43 = vpack.c.bf16 %v421_v35, %v421_v35  ;;  %v913_v44 = vpack.c.bf16 %v517_v36, %v517_v36 }
 0x113   :  { %733 = vst.msk [vmem:[%s1410_s3 + $0x50] sm:$0xf] %vm712_vm1, %v886_v39  ;;  %757 = vst.msk [vmem:[%s1410_s3 + $0xb0] sm:$0xf] %vm712_vm1, %v910_v40  ;;  %v887_v28 = vpack.c.bf16 %v413_v41, %v413_v41  ;;  %v911_v45 = vpack.c.bf16 %v509_v42, %v509_v42 }
 0x114   :  { %736 = vst.msk [vmem:[%s1410_s3 + $0x5c] sm:$0xf] %vm712_vm1, %v889_v43  ;;  %760 = vst.msk [vmem:[%s1410_s3 + $0xbc] sm:$0xf] %vm712_vm1, %v913_v44 }
 0x115   :  { %734 = vst.msk [vmem:[%s1410_s3 + $0x54] sm:$0xf] %vm712_vm1, %v887_v28  ;;  %758 = vst.msk [vmem:[%s1410_s3 + $0xb4] sm:$0xf] %vm712_vm1, %v911_v45 }

</bundles_post_ra>
